<compile_context>
chip_gen: v7x
topology: tpu7x:2x2x1
jax: 0.10.0
libtpu: 0.0.40
codegen_flags: <defaults>
</compile_context>

<pallas_src>
import jax
import jax.numpy as jnp
from jax.experimental import pallas as pl
from jax.experimental.pallas import tpu as pltpu

_VMEM_LIMIT = 32 * 1024 * 1024  # scoped-VMEM raise with headroom on v5e/v6e/v7x


# ----------------------------------------------------------------------------
# helpers
# ----------------------------------------------------------------------------
def _round_up(x, m):
    return ((x + m - 1) // m) * m


def _row_tile(m):
    """Row tile for token-parallel kernels: as large as useful, but >=2 grid
    steps whenever possible so both v7x TensorCores get work."""
    m8 = _round_up(max(m, 1), 8)
    if m8 <= 64:
        return m8
    if m8 <= 1024:
        return _round_up((m8 + 1) // 2, 8)   # exactly 2 steps
    return 512


def _pad_rows(x, tm):
    m = x.shape[0]
    mp = _round_up(m, tm)
    if mp != m:
        x = jnp.pad(x, ((0, mp - m), (0, 0)))
    return x


def _cparams(n_grid):
    return pltpu.CompilerParams(dimension_semantics=("parallel",) * n_grid,
                                vmem_limit_bytes=_VMEM_LIMIT)


# ----------------------------------------------------------------------------
# Pallas kernels — token matmul family (bf16 MXU operands, f32 accumulate)
# ----------------------------------------------------------------------------
def _matmul_kernel(x_ref, w_ref, o_ref):
    o_ref[...] = jnp.dot(x_ref[...].astype(jnp.bfloat16), w_ref[...],
                         preferred_element_type=jnp.float32)


def pallas_matmul(x, w):
    """x: (M, K) f32, w: (K, N) f32 -> (M, N) f32 (bf16 MXU operands)."""
    m, k = x.shape
    n = w.shape[1]
    tm = _row_tile(m)
    xp = _pad_rows(x, tm)
    mp = xp.shape[0]
    out = pl.pallas_call(
        _matmul_kernel,
        out_shape=jax.ShapeDtypeStruct((mp, n), jnp.float32),
        grid=(mp // tm,),
        in_specs=[pl.BlockSpec((tm, k), lambda i: (i, 0)),
                  pl.BlockSpec((k, n), lambda i: (0, 0))],
        out_specs=pl.BlockSpec((tm, n), lambda i: (i, 0)),
        compiler_params=_cparams(1),
    )(xp, w.astype(jnp.bfloat16))
    return out[:m]


def _ln_matmul_kernel(x_ref, g_ref, b_ref, w_ref, o_ref):
    # WithBias LayerNorm (f32, unbiased=False var) fused into the 1x1 conv.
    x = x_ref[...]
    mu = jnp.mean(x, axis=-1, keepdims=True)
    var = jnp.mean((x - mu) * (x - mu), axis=-1, keepdims=True)
    y = (x - mu) / jnp.sqrt(var + 1e-5) * g_ref[...] + b_ref[...]
    o_ref[...] = jnp.dot(y.astype(jnp.bfloat16), w_ref[...],
                         preferred_element_type=jnp.float32)


def pallas_ln_matmul(x, gamma, beta, w):
    m, c = x.shape
    n = w.shape[1]
    tm = _row_tile(m)
    xp = _pad_rows(x, tm)
    mp = xp.shape[0]
    out = pl.pallas_call(
        _ln_matmul_kernel,
        out_shape=jax.ShapeDtypeStruct((mp, n), jnp.float32),
        grid=(mp // tm,),
        in_specs=[pl.BlockSpec((tm, c), lambda i: (i, 0)),
                  pl.BlockSpec((1, c), lambda i: (0, 0)),
                  pl.BlockSpec((1, c), lambda i: (0, 0)),
                  pl.BlockSpec((c, n), lambda i: (0, 0))],
        out_specs=pl.BlockSpec((tm, n), lambda i: (i, 0)),
        compiler_params=_cparams(1),
    )(xp, gamma.reshape(1, c), beta.reshape(1, c), w.astype(jnp.bfloat16))
    return out[:m]


def _matmul_res_kernel(x_ref, w_ref, r_ref, o_ref):
    o_ref[...] = jnp.dot(x_ref[...].astype(jnp.bfloat16), w_ref[...],
                         preferred_element_type=jnp.float32) + r_ref[...]


def pallas_matmul_res(x, w, res):
    """(x @ w) + res — residual add fused into the matmul (project_out)."""
    m, k = x.shape
    n = w.shape[1]
    tm = _row_tile(m)
    xp = _pad_rows(x, tm)
    rp = _pad_rows(res, tm)
    mp = xp.shape[0]
    out = pl.pallas_call(
        _matmul_res_kernel,
        out_shape=jax.ShapeDtypeStruct((mp, n), jnp.float32),
        grid=(mp // tm,),
        in_specs=[pl.BlockSpec((tm, k), lambda i: (i, 0)),
                  pl.BlockSpec((k, n), lambda i: (0, 0)),
                  pl.BlockSpec((tm, n), lambda i: (i, 0))],
        out_specs=pl.BlockSpec((tm, n), lambda i: (i, 0)),
        compiler_params=_cparams(1),
    )(xp, w.astype(jnp.bfloat16), rp)
    return out[:m]


def _erf(x):
    # Abramowitz & Stegun 7.1.26 polynomial, |err| < 1.5e-7 (exact-GELU proxy).
    a1, a2, a3, a4, a5 = 0.254829592, -0.284496736, 1.421413741, -1.453152027, 1.061405429
    p = 0.3275911
    s = jnp.where(x >= 0.0, 1.0, -1.0)
    xa = jnp.abs(x)
    t = 1.0 / (1.0 + p * xa)
    y = 1.0 - ((((a5 * t + a4) * t + a3) * t + a2) * t + a1) * t * jnp.exp(-xa * xa)
    return s * y


def _gelugate_matmul_res_kernel(x1_ref, x2_ref, w_ref, r_ref, o_ref):
    # GELU(x1)*x2 gating (f32) fused into the ffn_out matmul + residual add.
    x1 = x1_ref[...]
    g = 0.5 * x1 * (1.0 + _erf(x1 * 0.7071067811865476)) * x2_ref[...]
    o_ref[...] = jnp.dot(g.astype(jnp.bfloat16), w_ref[...],
                         preferred_element_type=jnp.float32) + r_ref[...]


def pallas_gelugate_matmul_res(x1, x2, w, res):
    m, h = x1.shape
    n = w.shape[1]
    tm = _row_tile(m)
    x1p = _pad_rows(x1, tm)
    x2p = _pad_rows(x2, tm)
    rp = _pad_rows(res, tm)
    mp = x1p.shape[0]
    out = pl.pallas_call(
        _gelugate_matmul_res_kernel,
        out_shape=jax.ShapeDtypeStruct((mp, n), jnp.float32),
        grid=(mp // tm,),
        in_specs=[pl.BlockSpec((tm, h), lambda i: (i, 0)),
                  pl.BlockSpec((tm, h), lambda i: (i, 0)),
                  pl.BlockSpec((h, n), lambda i: (0, 0)),
                  pl.BlockSpec((tm, n), lambda i: (i, 0))],
        out_specs=pl.BlockSpec((tm, n), lambda i: (i, 0)),
        compiler_params=_cparams(1),
    )(x1p, x2p, w.astype(jnp.bfloat16), rp)
    return out[:m]


# ----------------------------------------------------------------------------
# Pallas kernels — depthwise 3x3x3 conv (halo slabs, no 27x intermediate)
# ----------------------------------------------------------------------------
def _dwconv_kernel(x0_ref, x1_ref, x2_ref, w_ref, o_ref):
    # x*: (1,1,Wp,Dp,C) slabs at H offsets 0/1/2; w: (27,1,C); o: (1,1,W,D,C)
    ww, dd = o_ref.shape[2], o_ref.shape[3]
    total = None
    for i, xr in enumerate((x0_ref, x1_ref, x2_ref)):
        acc = None                      # independent accumulator per H tap
        for j in range(3):
            for k in range(3):
                t = i * 9 + j * 3 + k
                v = xr[0, 0, j:j + ww, k:k + dd, :] * w_ref[t]
                acc = v if acc is None else acc + v
        total = acc if total is None else total + acc
    o_ref[0, 0] = total


def pallas_dwconv3x3(x_vol, w_taps):
    """Depthwise 3x3x3 conv, stride 1, pad 1, no bias.
    x_vol: (B,H,W,D,C) f32; w_taps: (27, C), taps ordered (kh,kw,kd) row-major."""
    b, hh, ww, dd, c = x_vol.shape
    xpad = jnp.pad(x_vol, ((0, 0), (1, 1), (1, 1), (1, 1), (0, 0)))
    wp, dp = ww + 2, dd + 2
    w3 = w_taps.reshape(27, 1, c)

    def xspec(i):
        return pl.BlockSpec((1, 1, wp, dp, c),
                            lambda bb, h, i=i: (bb, h + i, 0, 0, 0))

    out = pl.pallas_call(
        _dwconv_kernel,
        out_shape=jax.ShapeDtypeStruct((b, hh, ww, dd, c), jnp.float32),
        grid=(b, hh),
        in_specs=[xspec(0), xspec(1), xspec(2),
                  pl.BlockSpec((27, 1, c), lambda bb, h: (0, 0, 0))],
        out_specs=pl.BlockSpec((1, 1, ww, dd, c),
                               lambda bb, h: (bb, h, 0, 0, 0)),
        compiler_params=_cparams(2),
    )(xpad, xpad, xpad, w3)
    return out


# ----------------------------------------------------------------------------
# Pallas kernels — dense 3x3x3 conv via in-kernel tap accumulation
# ----------------------------------------------------------------------------
def _conv3x3_kernel(x00, x01, x02, x10, x11, x12, x20, x21, x22, w_ref, o_ref):
    # x*: (1,1,1,Dp,Cin) bf16 slabs for the 9 (kh,kw) offsets; w: (27,Cin,Cout)
    dd = o_ref.shape[3]
    xs = (x00, x01, x02, x10, x11, x12, x20, x21, x22)
    acc = None
    for ij in range(9):
        xr = xs[ij]
        for k in range(3):
            t = ij * 3 + k
            part = jnp.dot(xr[0, 0, 0, k:k + dd, :], w_ref[t],
                           preferred_element_type=jnp.float32)
            acc = part if acc is None else acc + part
    o_ref[0, 0, 0] = acc


def conv3x3_dense(x_vol, w):
    """Dense 3x3x3 Conv3d, stride 1, pad 1, bias=False (down/up-sample convs).
    w: (3,3,3,Cin,Cout).  No im2col intermediate: 9 shifted halo slabs are read
    per (b,h,w) output row and the 27 K=Cin dots accumulate in f32."""
    b, hh, ww, dd, cin = x_vol.shape
    cout = w.shape[-1]
    xpad = jnp.pad(x_vol, ((0, 0), (1, 1), (1, 1), (1, 1), (0, 0))).astype(jnp.bfloat16)
    dp = dd + 2
    w27 = w.reshape(27, cin, cout).astype(jnp.bfloat16)

    def xspec(i, j):
        return pl.BlockSpec((1, 1, 1, dp, cin),
                            lambda bb, h, wq, i=i, j=j: (bb, h + i, wq + j, 0, 0))

    in_specs = [xspec(i, j) for i in range(3) for j in range(3)]
    in_specs.append(pl.BlockSpec((27, cin, cout), lambda bb, h, wq: (0, 0, 0)))

    out = pl.pallas_call(
        _conv3x3_kernel,
        out_shape=jax.ShapeDtypeStruct((b, hh, ww, dd, cout), jnp.float32),
        grid=(b, hh, ww),
        in_specs=in_specs,
        out_specs=pl.BlockSpec((1, 1, 1, dd, cout),
                               lambda bb, h, wq: (bb, h, wq, 0, 0)),
        compiler_params=_cparams(3),
    )(*([xpad] * 9), w27)
    return out


def conv3x3_im2col(x_vol, w):
    """Dense 3x3x3 conv via im2col — only used where Cin is tiny (patch_embed,
    Cin=1) so the 27*Cin-wide cols intermediate is negligible."""
    b, hh, ww, dd, cin = x_vol.shape
    cout = w.shape[-1]
    xpad = jnp.pad(x_vol, ((0, 0), (1, 1), (1, 1), (1, 1), (0, 0)))
    cols = jnp.concatenate([xpad[:, i:i + hh, j:j + ww, k:k + dd, :]
                            for i in range(3) for j in range(3) for k in range(3)],
                           axis=-1)
    y = pallas_matmul(cols.reshape(b * hh * ww * dd, 27 * cin),
                      w.reshape(27 * cin, cout))
    return y.reshape(b, hh, ww, dd, cout)


def conv3x3_plain(x_vol, w):
    """Final Cout=1 output conv left to plain JAX (a (TM,1) Pallas output block
    would be fully lane-masked / 1/128 of the MXU; negligible FLOPs anyway)."""
    b, hh, ww, dd, cin = x_vol.shape
    cout = w.shape[-1]
    xpad = jnp.pad(x_vol, ((0, 0), (1, 1), (1, 1), (1, 1), (0, 0)))
    w27 = w.reshape(27, cin, cout)
    out = jnp.zeros((b, hh, ww, dd, cout), jnp.float32)
    t = 0
    for i in range(3):
        for j in range(3):
            for k in range(3):
                out = out + jnp.einsum('bhwdc,co->bhwdo',
                                       xpad[:, i:i + hh, j:j + ww, k:k + dd, :],
                                       w27[t])
                t += 1
    return out


# ----------------------------------------------------------------------------
# Pallas kernel — channel attention (heads grouped per grid step)
# ----------------------------------------------------------------------------
def _attn_kernel(q_ref, k_ref, v_ref, t_ref, o_ref):
    q = q_ref[...]                                   # (G, Ch, Npad) f32
    k = k_ref[...]
    v = v_ref[...]
    # torch.nn.functional.normalize(dim=-1, eps=1e-12); zero-padded N is a no-op
    qn = q / jnp.maximum(jnp.sqrt(jnp.sum(q * q, axis=-1, keepdims=True)), 1e-12)
    kn = k / jnp.maximum(jnp.sqrt(jnp.sum(k * k, axis=-1, keepdims=True)), 1e-12)
    attn = jnp.einsum('gcn,gdn->gcd', qn.astype(jnp.bfloat16),
                      kn.astype(jnp.bfloat16),
                      preferred_element_type=jnp.float32)       # (G, Ch, Ch)
    attn = attn * t_ref[...]                          # per-head temperature
    attn = attn - jnp.max(attn, axis=-1, keepdims=True)
    e = jnp.exp(attn)
    p = e / jnp.sum(e, axis=-1, keepdims=True)
    o_ref[...] = jnp.einsum('gcd,gdn->gcn', p.astype(jnp.bfloat16),
                            v.astype(jnp.bfloat16),
                            preferred_element_type=jnp.float32)


def channel_attention(q, k, v, temp):
    """Channel attention.  q,k,v: (BH, Ch, N) f32; temp: (BH,) f32."""
    bh, ch, n = q.shape
    if n < 128:
        # Small-N levels (latent N=1, level3 N=8, ...): padding to 128 lanes
        # would be mostly zero DMA/compute — do the microscopic math in JAX.
        qn = q / jnp.maximum(jnp.sqrt(jnp.sum(q * q, -1, keepdims=True)), 1e-12)
        kn = k / jnp.maximum(jnp.sqrt(jnp.sum(k * k, -1, keepdims=True)), 1e-12)
        attn = jnp.einsum('gcn,gdn->gcd', qn, kn) * temp[:, None, None]
        attn = jax.nn.softmax(attn, axis=-1)
        return jnp.einsum('gcd,gdn->gcn', attn, v)

    npad = _round_up(n, 128)
    if npad != n:
        pad = ((0, 0), (0, 0), (0, npad - n))
        q, k, v = jnp.pad(q, pad), jnp.pad(k, pad), jnp.pad(v, pad)

    # Group heads per grid step (batched in-kernel einsum), keeping >=2 grid
    # steps when possible so both v7x TensorCores are busy.
    per_head = ch * npad * 4 * 4
    g = max(1, min(bh, (4 * 1024 * 1024) // max(per_head, 1)))
    while bh % g:
        g -= 1
    if g == bh and bh >= 2:
        g = bh // 2
        while bh % g:
            g -= 1

    tvol = temp.reshape(bh, 1, 1)
    out = pl.pallas_call(
        _attn_kernel,
        out_shape=jax.ShapeDtypeStruct((bh, ch, npad), jnp.float32),
        grid=(bh // g,),
        in_specs=[pl.BlockSpec((g, ch, npad), lambda i: (i, 0, 0)),
                  pl.BlockSpec((g, ch, npad), lambda i: (i, 0, 0)),
                  pl.BlockSpec((g, ch, npad), lambda i: (i, 0, 0)),
                  pl.BlockSpec((g, 1, 1), lambda i: (i, 0, 0))],
        out_specs=pl.BlockSpec((g, ch, npad), lambda i: (i, 0, 0)),
        compiler_params=_cparams(1),
    )(q, k, v, tvol)
    return out[:, :, :n]


# ----------------------------------------------------------------------------
# glue: 1x1 conv, trilinear resize
# ----------------------------------------------------------------------------
def conv1x1(x_vol, w):
    """1x1x1 Conv3d, bias=False.  w: (Cin, Cout)."""
    b, hh, ww, dd, cin = x_vol.shape
    y = pallas_matmul(x_vol.reshape(b * hh * ww * dd, cin), w)
    return y.reshape(b, hh, ww, dd, w.shape[1])


# TODO(synk): trilinear Upsample(align_corners=False) is gather/interp glue with
# no natural Pallas tile pattern at these sizes; it is done exactly in plain JAX.
def _linear_resize_axis(x, axis, out_size):
    in_size = x.shape[axis]
    scale = in_size / out_size
    coord = jnp.maximum((jnp.arange(out_size, dtype=jnp.float32) + 0.5) * scale - 0.5, 0.0)
    idx0 = jnp.floor(coord).astype(jnp.int32)
    idx1 = jnp.minimum(idx0 + 1, in_size - 1)
    lam = coord - idx0.astype(jnp.float32)
    x0 = jnp.take(x, idx0, axis=axis)
    x1 = jnp.take(x, idx1, axis=axis)
    shape = [1] * x.ndim
    shape[axis] = out_size
    lam = lam.reshape(shape)
    return x0 * (1.0 - lam) + x1 * lam


def trilinear_resize(x_vol, scale_factor):
    """Matches nn.Upsample(scale_factor, mode='trilinear', align_corners=False)."""
    _, hh, ww, dd, _ = x_vol.shape
    y = x_vol
    for ax, in_sz in zip((1, 2, 3), (hh, ww, dd)):
        y = _linear_resize_axis(y, ax, int(in_sz * scale_factor))
    return y


# ----------------------------------------------------------------------------
# modules
# ----------------------------------------------------------------------------
class KeyGen:
    def __init__(self, key):
        self.key = key

    def __call__(self):
        self.key, sub = jax.random.split(self.key)
        return sub


def _w(kg, shape, scale=0.08):
    return jax.random.normal(kg(), shape, dtype=jnp.float32) * scale


def init_block(kg, dim, heads, ffn_factor=1):
    hid = int(dim * ffn_factor)
    return dict(
        heads=heads, dim=dim, hid=hid,
        norm1_w=jnp.ones((dim,), jnp.float32), norm1_b=jnp.zeros((dim,), jnp.float32),
        temperature=jnp.ones((heads,), jnp.float32),
        w_qkv=_w(kg, (dim, 3 * dim)),
        w_qkv_dw=_w(kg, (27, 3 * dim)),
        w_proj=_w(kg, (dim, dim)),
        norm2_w=jnp.ones((dim,), jnp.float32), norm2_b=jnp.zeros((dim,), jnp.float32),
        w_ffn_in=_w(kg, (dim, 2 * hid)),
        w_ffn_dw=_w(kg, (27, 2 * hid)),
        w_ffn_out=_w(kg, (hid, dim)),
    )


def transformer_block(x_vol, p):
    """TransformerBlockSimple: pre_post_norm=0, Conv_type=0, locked_attn=0, bias=False."""
    b, hh, ww, dd, c = x_vol.shape
    n = hh * ww * dd
    m = b * n
    heads, hid = p["heads"], p["hid"]
    ch = c // heads
    x_tok = x_vol.reshape(m, c)

    # ---- x = x + Attention(norm1(x)) ----
    qkv = pallas_ln_matmul(x_tok, p["norm1_w"], p["norm1_b"], p["w_qkv"])
    qkv = pallas_dwconv3x3(qkv.reshape(b, hh, ww, dd, 3 * c), p["w_qkv_dw"])
    qkv = qkv.reshape(b, n, 3 * c)
    q, k, v = jnp.split(qkv, 3, axis=-1)

    def to_heads(t):   # (b, n, head*ch) -> (b*head, ch, n)
        return jnp.transpose(t, (0, 2, 1)).reshape(b * heads, ch, n)

    temp = jnp.tile(p["temperature"][None, :], (b, 1)).reshape(b * heads)
    oh = channel_attention(to_heads(q), to_heads(k), to_heads(v), temp)
    attn_tok = jnp.transpose(oh.reshape(b, heads * ch, n), (0, 2, 1)).reshape(m, c)
    x_tok = pallas_matmul_res(attn_tok, p["w_proj"], x_tok)      # proj + residual

    # ---- x = x + FeedForward(norm2(x)) ----
    t = pallas_ln_matmul(x_tok, p["norm2_w"], p["norm2_b"], p["w_ffn_in"])
    t = pallas_dwconv3x3(t.reshape(b, hh, ww, dd, 2 * hid), p["w_ffn_dw"])
    t = t.reshape(m, 2 * hid)
    x_tok = pallas_gelugate_matmul_res(t[:, :hid], t[:, hid:], p["w_ffn_out"], x_tok)
    return x_tok.reshape(b, hh, ww, dd, c)


def init_restormer(seed=0, inp_channels=1, out_channels=1, dim=16,
                   num_blocks=(1, 1, 1, 1), num_refinement_blocks=1,
                   heads=(1, 2, 4, 8), ffn_expansion_factor=1):
    kg = KeyGen(jax.random.PRNGKey(seed))
    d1, d2, d3, d4 = dim, dim * 2, dim * 4, dim * 8
    f = ffn_expansion_factor
    return dict(
        patch_embed=_w(kg, (3, 3, 3, inp_channels, d1)),
        encoder_level1=[init_block(kg, d1, heads[0], f) for _ in range(num_blocks[0])],
        down1_2=_w(kg, (3, 3, 3, d1, 2 * d1)),
        encoder_level2=[init_block(kg, d2, heads[1], f) for _ in range(num_blocks[1])],
        down2_3=_w(kg, (3, 3, 3, d2, 2 * d2)),
        encoder_level3=[init_block(kg, d3, heads[2], f) for _ in range(num_blocks[2])],
        down3_4=_w(kg, (3, 3, 3, d3, 2 * d3)),
        latent=[init_block(kg, d4, heads[3], f) for _ in range(num_blocks[3])],
        up4_3=_w(kg, (3, 3, 3, d4, d4 // 2)),
        reduce3=_w(kg, (d4, d3)),
        decoder_level3=[init_block(kg, d3, heads[2], f) for _ in range(num_blocks[2])],
        up3_2=_w(kg, (3, 3, 3, d3, d3 // 2)),
        reduce2=_w(kg, (d3, d2)),
        decoder_level2=[init_block(kg, d2, heads[1], f) for _ in range(num_blocks[1])],
        up2_1=_w(kg, (3, 3, 3, d2, d2 // 2)),
        decoder_level1=[init_block(kg, d2, heads[0], f) for _ in range(num_blocks[0])],
        refinement=[init_block(kg, d2, heads[0], f) for _ in range(num_refinement_blocks)],
        output=_w(kg, (3, 3, 3, d2, out_channels)),
    )


def restormer_forward(params, inp_img):
    """inp_img: (B, C, H, W, D) like the PyTorch module; returns same layout."""
    x = jnp.transpose(inp_img, (0, 2, 3, 4, 1)).astype(jnp.float32)   # channel-last

    out_enc1 = conv3x3_im2col(x, params["patch_embed"])
    for p in params["encoder_level1"]:
        out_enc1 = transformer_block(out_enc1, p)

    out_enc2 = trilinear_resize(conv3x3_dense(out_enc1, params["down1_2"]), 0.5)
    for p in params["encoder_level2"]:
        out_enc2 = transformer_block(out_enc2, p)

    out_enc3 = trilinear_resize(conv3x3_dense(out_enc2, params["down2_3"]), 0.5)
    for p in params["encoder_level3"]:
        out_enc3 = transformer_block(out_enc3, p)

    latent = trilinear_resize(conv3x3_dense(out_enc3, params["down3_4"]), 0.5)
    for p in params["latent"]:
        latent = transformer_block(latent, p)

    inp_dec3 = trilinear_resize(conv3x3_dense(latent, params["up4_3"]), 2.0)
    inp_dec3 = conv1x1(jnp.concatenate([inp_dec3, out_enc3], axis=-1), params["reduce3"])
    out_dec3 = inp_dec3
    for p in params["decoder_level3"]:
        out_dec3 = transformer_block(out_dec3, p)

    inp_dec2 = trilinear_resize(conv3x3_dense(out_dec3, params["up3_2"]), 2.0)
    inp_dec2 = conv1x1(jnp.concatenate([inp_dec2, out_enc2], axis=-1), params["reduce2"])
    out_dec2 = inp_dec2
    for p in params["decoder_level2"]:
        out_dec2 = transformer_block(out_dec2, p)

    inp_dec1 = trilinear_resize(conv3x3_dense(out_dec2, params["up2_1"]), 2.0)
    out_dec1 = jnp.concatenate([inp_dec1, out_enc1], axis=-1)
    for p in params["decoder_level1"]:
        out_dec1 = transformer_block(out_dec1, p)
    for p in params["refinement"]:
        out_dec1 = transformer_block(out_dec1, p)

    # final Cout=1 conv in plain JAX, fused with the + inp_img residual
    out = conv3x3_plain(out_dec1, params["output"]) + x
    return jnp.transpose(out, (0, 4, 1, 2, 3))


if __name__ == "__main__":
    key = jax.random.PRNGKey(0)
    # (B, C, H, W, D) — small spatial size divisible by 8 for the 3 downsamples.
    inp_img = jax.random.normal(key, (2, 1, 8, 8, 8), dtype=jnp.float32)
    params = init_restormer(seed=0, inp_channels=1, out_channels=1, dim=16,
                            num_blocks=(1, 1, 1, 1), num_refinement_blocks=1,
                            heads=(1, 2, 4, 8), ffn_expansion_factor=1)
    out = restormer_forward(params, inp_img)
    out = jax.block_until_ready(out)
    assert out.shape == inp_img.shape and out.dtype == jnp.float32
    print("KERNEL_OK")
</pallas_src>

<mosaic_0001>
module attributes {stable_mosaic.version = 11 : i64} {
  func.func @_matmul_kernel(%arg0: i32, %arg1: memref<512x27xf32, #tpu.memory_space<vmem>>, %arg2: memref<27x16xbf16, #tpu.memory_space<vmem>>, %arg3: memref<512x16xf32, #tpu.memory_space<vmem>>) attributes {dimension_semantics = [#tpu.dimension_semantics<parallel>], iteration_bounds = array<i64: 2>, scalar_prefetch = 0 : i64, scratch_operands = 0 : i64, tpu.core_type = #tpu.core_type<tc>, window_params = [{transform_indices = @transform_0, window_bounds = array<i64: 512, 27>}, {pipeline_mode = #tpu.pipeline_mode<synchronous>, transform_indices = @transform_1, window_bounds = array<i64: 27, 16>}, {transform_indices = @transform_2, window_bounds = array<i64: 512, 16>}]} {
    %c0 = arith.constant 0 : index
    %c0_0 = arith.constant 0 : index
    %0 = vector.load %arg1[%c0, %c0_0] : memref<512x27xf32, #tpu.memory_space<vmem>>, vector<512x27xf32>
    %1 = arith.truncf %0 : vector<512x27xf32> to vector<512x27xbf16>
    %c0_1 = arith.constant 0 : index
    %c0_2 = arith.constant 0 : index
    %2 = vector.load %arg2[%c0_1, %c0_2] : memref<27x16xbf16, #tpu.memory_space<vmem>>, vector<27x16xbf16>
    %cst = arith.constant dense<0.000000e+00> : vector<512x16xf32>
    %3 = tpu.matmul %1, %2, %cst {dimension_numbers = #tpu.dot_dimension_numbers<[1], [0], [0], [1], [0, 0, 1, 1], [], []>} : vector<512x27xbf16>, vector<27x16xbf16>, vector<512x16xf32> -> vector<512x16xf32>
    %c0_3 = arith.constant 0 : index
    %c0_4 = arith.constant 0 : index
    %4 = vector.load %arg3[%c0_3, %c0_4] : memref<512x16xf32, #tpu.memory_space<vmem>>, vector<512x16xf32>
    tpu.vector_store %arg3[%c0_3, %c0_4], %3 {strides = array<i32>} : memref<512x16xf32, #tpu.memory_space<vmem>>, vector<512x16xf32>,
    return
  }
  func.func @transform_0(%arg0: i32) -> (i32, i32) {
    %c0_i32 = arith.constant 0 : i32
    %c0_i32_0 = arith.constant 0 : i32
    return %arg0, %c0_i32 : i32, i32
  }
  func.func @transform_1(%arg0: i32) -> (i32, i32) {
    %c0_i32 = arith.constant 0 : i32
    %c0_i32_0 = arith.constant 0 : i32
    %c0_i32_1 = arith.constant 0 : i32
    return %c0_i32, %c0_i32_0 : i32, i32
  }
  func.func @transform_2(%arg0: i32) -> (i32, i32) {
    %c0_i32 = arith.constant 0 : i32
    %c0_i32_0 = arith.constant 0 : i32
    return %arg0, %c0_i32 : i32, i32
  }
}

</mosaic_0001>

<bundles_post_ra>
// kernel: tpu_custom_call.1
= control target key start
LH: loop header
LB: loop body
LE: loop exit
PB: predicated region body
PF: predicated region fallthrough
CT: control target
= control target key end

     0   :  { %s959_s9 = smov 0   ;;  %s1217_s0 = inlined_call_operand.vmem [shape: f32[1024,27], index: 0, kind: input, shape index: {}]   ;;  %s1218_s1 = inlined_call_operand.vmem [shape: bf16[27,16], index: 1, kind: input, shape index: {}]   ;;  %s1219_s2 = inlined_call_operand.vmem [shape: f32[1024,16], index: 2, kind: output, shape index: {}]  }
   0x1 LB: > { %s773_s10 = sadd.s32 4294967295, %s941_s9   ;;  %p777_p0 = scmp.ge.s32.totalorder %s941_s9, 1  ;;  %s941_s9 = sphi %s959_s9, %s12_s9  }
   0x2   : > { %p113_p1 = scmp.lt.s32.totalorder %s941_s9, 3 }
   0x4   : > { %p114_p2 = pnand %p777_p0, %p113_p1 }
   0x5   : > { %v933_v0 = vld [vmem:[%s1218_s1] sm:$0xff] (!%p114_p2)   ;;  %vm356_vm0 = vcmask (!%p114_p2), 1044480   ;;  %v934_v1 = vld [vmem:[%s1218_s1 + $0x8] sm:$0x3f] (!%p114_p2)   ;;  %vm357_vm1 = vcmask (!%p114_p2), 1045504   ;;  %s778_s15 = sshll.u32 (!%p114_p2), %s773_s10, 6 }
   0x6   : > { %117 = sbr.rel (%p114_p2) target bundleno = 293 (0x125), region = 28  ;;  %852 = vmatprep.subr.bf16.mxu0 (!%p114_p2), %v933_v0  ;;  %920 = vmatprep.subr.bf16.mxu1 (!%p114_p2), %v933_v0  ;;  %v943_v2 = vmov (!%p114_p2), 65535   ;;  %p136_p3 = scmp.lt.s32.totalorder (!%p114_p2), %s778_s15, 127  ;;  %vm259_vm2 = vcmask (!%p114_p2), 220160   ;;  %vm652_vm3 = vcmask (!%p114_p2), 130048  }
   0x7   : > { %853 = vmatpush3.bf16.msra.mxu0 (!%p114_p2), %v933_v0  ;;  %922 = vmatpush3.bf16.msra.mxu1 (!%p114_p2), %v933_v0  ;;  %v358_v3 = vsel (!%p114_p2), %vm356_vm0, 4294967295, %v943_v2 }
   0x8   : > { %v359_v4 = vsel (!%p114_p2), %vm357_vm1, %v358_v3, 0 }
   0x9   : > { %v361_v5 = vand.u32 (!%p114_p2), %v934_v1, %v359_v4 }
   0xb   : > { %854 = vmatprep.subr.bf16.mxu0 (!%p114_p2), %v361_v5  ;;  %921 = vmatprep.subr.bf16.mxu1 (!%p114_p2), %v361_v5 }
   0xc   : > { %855 = vmatpush3.bf16.msra.mxu0 (!%p114_p2), %v361_v5  ;;  %923 = vmatpush3.bf16.msra.mxu1 (!%p114_p2), %v361_v5 }
   0xd   : > { %s1221_s15 = smov (!%p136_p3, %s778_s15), 127 }
   0xe   : > { %s779_s16 = sshll.u32 %s1221_s15, 3 }
   0xf   : > { %s981_s19 = scalar_lea.vmem %s1217_s0, %s779_s16  ;;  %s1084_s22 = scalar_lea.vmem %s1219_s2, %s779_s16 }
  0x10   : > { %v148_v6 = vld [vmem:[%s981_s19] sm:$0xff]  ;;  %v149_v7 = vld [vmem:[%s981_s19 + $0x8] sm:$0xff]  ;;  %v150_v11 = vld [vmem:[%s981_s19 + $0x10] sm:$0xff] }
  0x11   : > { %v180_v8 = vld [vmem:[%s981_s19 + $0x100] sm:$0xff]  ;;  %v212_v9 = vpack.c.bf16 %v149_v7, %v148_v6  ;;  %v181_v10 = vld [vmem:[%s981_s19 + $0x108] sm:$0xff]  ;;  %v151_v12 = vld [vmem:[%s981_s19 + $0x18] sm:$0xff] }
  0x12   : > { %v228_v13 = vpack.c.bf16 %v181_v10, %v180_v8  ;;  %v213_v14 = vpack.c.bf16 %v151_v12, %v150_v11  ;;  %v182_v15 = vld [vmem:[%s981_s19 + $0x110] sm:$0xff]  ;;  %v183_v16 = vld [vmem:[%s981_s19 + $0x118] sm:$0xff]  ;;  %v152_v17 = vld [vmem:[%s981_s19 + $0x20] sm:$0xff] }
  0x13   : > { %856 = vmatprep.mubr.msk.bf16.mxu0 %vm259_vm2, %v212_v9  ;;  %v229_v18 = vpack.c.bf16 %v183_v16, %v182_v15  ;;  %v153_v19 = vld [vmem:[%s981_s19 + $0x28] sm:$0xff]  ;;  %v184_v20 = vld [vmem:[%s981_s19 + $0x120] sm:$0xff]  ;;  %v154_v24 = vld [vmem:[%s981_s19 + $0x30] sm:$0xff] }
  0x14   : > { %v185_v21 = vld [vmem:[%s981_s19 + $0x128] sm:$0xff]  ;;  %888 = vmatprep.mubr.msk.bf16.mxu1 %vm259_vm2, %v228_v13  ;;  %857 = vmatmul.mubr.msk.bf16.vlgmr.msra.gmra.mrb[0].mxu0 %vm259_vm2, %v213_v14  ;;  %v214_v22 = vpack.c.bf16 %v153_v19, %v152_v17  ;;  %v155_v25 = vld [vmem:[%s981_s19 + $0x38] sm:$0xff]  ;;  %v186_v26 = vld [vmem:[%s981_s19 + $0x130] sm:$0xff] }
  0x15   : > { %v230_v23 = vpack.c.bf16 %v185_v21, %v184_v20  ;;  %889 = vmatmul.mubr.msk.bf16.vlgmr.msra.gmra.mrb[0].mxu1 %vm259_vm2, %v229_v18  ;;  %v187_v27 = vld [vmem:[%s981_s19 + $0x138] sm:$0xff]  ;;  %v156_v28 = vld [vmem:[%s981_s19 + $0x40] sm:$0xff]  ;;  %v157_v29 = vld [vmem:[%s981_s19 + $0x48] sm:$0xff]  ;;  %v215_v32 = vpack.c.bf16 %v155_v25, %v154_v24 }
  0x16   : > { %860 = vmatprep.mubr.msk.bf16.mxu0 %vm259_vm2, %v214_v22  ;;  %v188_v30 = vld [vmem:[%s981_s19 + $0x140] sm:$0xff]  ;;  %v189_v31 = vld [vmem:[%s981_s19 + $0x148] sm:$0xff]  ;;  %v231_v33 = vpack.c.bf16 %v187_v27, %v186_v26  ;;  %v216_v34 = vpack.c.bf16 %v157_v29, %v156_v28  ;;  %v158_v36 = vld [vmem:[%s981_s19 + $0x50] sm:$0xff] }
  0x17   : > { %892 = vmatprep.mubr.msk.bf16.mxu1 %vm259_vm2, %v230_v23  ;;  %v232_v35 = vpack.c.bf16 %v189_v31, %v188_v30  ;;  %v159_v37 = vld [vmem:[%s981_s19 + $0x58] sm:$0xff]  ;;  %v190_v38 = vld [vmem:[%s981_s19 + $0x150] sm:$0xff]  ;;  %v160_v40 = vld [vmem:[%s981_s19 + $0x60] sm:$0xff] }
  0x18   : > { %v191_v39 = vld [vmem:[%s981_s19 + $0x158] sm:$0xff]  ;;  %v161_v41 = vld [vmem:[%s981_s19 + $0x68] sm:$0xff]  ;;  %v192_v42 = vld [vmem:[%s981_s19 + $0x160] sm:$0xff]  ;;  %v217_v44 = vpack.c.bf16 %v159_v37, %v158_v36 }
  0x19   : > { %v193_v43 = vld [vmem:[%s981_s19 + $0x168] sm:$0xff]  ;;  %v233_v45 = vpack.c.bf16 %v191_v39, %v190_v38  ;;  %v218_v46 = vpack.c.bf16 %v161_v41, %v160_v40  ;;  %v162_v48 = vld [vmem:[%s981_s19 + $0x70] sm:$0xff]  ;;  %v163_v49 = vld [vmem:[%s981_s19 + $0x78] sm:$0xff] }
  0x1a   : > { %v234_v47 = vpack.c.bf16 %v193_v43, %v192_v42  ;;  %v194_v50 = vld [vmem:[%s981_s19 + $0x170] sm:$0xff]  ;;  %v195_v51 = vld [vmem:[%s981_s19 + $0x178] sm:$0xff]  ;;  %v164_v52 = vld [vmem:[%s981_s19 + $0x80] sm:$0xff]  ;;  %v219_v56 = vpack.c.bf16 %v163_v49, %v162_v48 }
  0x1b   : > { %v165_v53 = vld [vmem:[%s981_s19 + $0x88] sm:$0xff]  ;;  %v196_v54 = vld [vmem:[%s981_s19 + $0x180] sm:$0xff]  ;;  %v235_v57 = vpack.c.bf16 %v195_v51, %v194_v50  ;;  %v166_v60 = vld [vmem:[%s981_s19 + $0x90] sm:$0xff] }
  0x1c   : > { %861 = vmatmul.mubr.msk.bf16.gmra.mrb[4].mxu0 %vm259_vm2, %v215_v32  ;;  %v197_v55 = vld [vmem:[%s981_s19 + $0x188] sm:$0xff]  ;;  %v220_v58 = vpack.c.bf16 %v165_v53, %v164_v52  ;;  %v167_v61 = vld [vmem:[%s981_s19 + $0x98] sm:$0xff]  ;;  %v198_v62 = vld [vmem:[%s981_s19 + $0x190] sm:$0xff] }
  0x1d   : > { %893 = vmatmul.mubr.msk.bf16.gmra.mrb[4].mxu1 %vm259_vm2, %v231_v33  ;;  %864 = vmatprep.mubr.msk.bf16.mxu0 %vm259_vm2, %v216_v34  ;;  %v236_v59 = vpack.c.bf16 %v197_v55, %v196_v54  ;;  %v199_v63 = vld [vmem:[%s981_s19 + $0x198] sm:$0xff]  ;;  %v168_v0 = vld [vmem:[%s981_s19 + $0xa0] sm:$0xff]  ;;  %v169_v1 = vld [vmem:[%s981_s19 + $0xa8] sm:$0xff]  ;;  %v221_v4 = vpack.c.bf16 %v167_v61, %v166_v60 }
  0x1e   : > { %896 = vmatprep.mubr.msk.bf16.mxu1 %vm259_vm2, %v232_v35  ;;  %v200_v2 = vld [vmem:[%s981_s19 + $0x1a0] sm:$0xff]  ;;  %v201_v3 = vld [vmem:[%s981_s19 + $0x1a8] sm:$0xff]  ;;  %v237_v5 = vpack.c.bf16 %v199_v63, %v198_v62  ;;  %v222_v6 = vpack.c.bf16 %v169_v1, %v168_v0  ;;  %v170_v8 = vld [vmem:[%s981_s19 + $0xb0] sm:$0xff] }
  0x1f   : > { %v238_v7 = vpack.c.bf16 %v201_v3, %v200_v2  ;;  %v171_v9 = vld [vmem:[%s981_s19 + $0xb8] sm:$0xff]  ;;  %v202_v10 = vld [vmem:[%s981_s19 + $0x1b0] sm:$0xff]  ;;  %v172_v12 = vld [vmem:[%s981_s19 + $0xc0] sm:$0xff] }
  0x20   : > { %v203_v11 = vld [vmem:[%s981_s19 + $0x1b8] sm:$0xff]  ;;  %v173_v13 = vld [vmem:[%s981_s19 + $0xc8] sm:$0xff]  ;;  %v204_v14 = vld [vmem:[%s981_s19 + $0x1c0] sm:$0xff]  ;;  %v223_v16 = vpack.c.bf16 %v171_v9, %v170_v8 }
  0x21   : > { %v205_v15 = vld [vmem:[%s981_s19 + $0x1c8] sm:$0xff]  ;;  %v239_v17 = vpack.c.bf16 %v203_v11, %v202_v10  ;;  %v224_v18 = vpack.c.bf16 %v173_v13, %v172_v12  ;;  %v174_v20 = vld [vmem:[%s981_s19 + $0xd0] sm:$0xff]  ;;  %v175_v21 = vld [vmem:[%s981_s19 + $0xd8] sm:$0xff] }
  0x22   : > { %v240_v19 = vpack.c.bf16 %v205_v15, %v204_v14  ;;  %v206_v22 = vld [vmem:[%s981_s19 + $0x1d0] sm:$0xff]  ;;  %v207_v23 = vld [vmem:[%s981_s19 + $0x1d8] sm:$0xff]  ;;  %v176_v24 = vld [vmem:[%s981_s19 + $0xe0] sm:$0xff]  ;;  %v225_v28 = vpack.c.bf16 %v175_v21, %v174_v20 }
  0x23   : > { %v177_v25 = vld [vmem:[%s981_s19 + $0xe8] sm:$0xff]  ;;  %v208_v26 = vld [vmem:[%s981_s19 + $0x1e0] sm:$0xff]  ;;  %v241_v29 = vpack.c.bf16 %v207_v23, %v206_v22  ;;  %v178_v32 = vld [vmem:[%s981_s19 + $0xf0] sm:$0xff] }
  0x24   : > { %865 = vmatmul.mubr.msk.bf16.gmra.mrb[8].mxu0 %vm259_vm2, %v217_v44  ;;  %v209_v27 = vld [vmem:[%s981_s19 + $0x1e8] sm:$0xff]  ;;  %v226_v30 = vpack.c.bf16 %v177_v25, %v176_v24  ;;  %v179_v33 = vld [vmem:[%s981_s19 + $0xf8] sm:$0xff]  ;;  %v210_v34 = vld [vmem:[%s981_s19 + $0x1f0] sm:$0xff] }
  0x25   : > { %897 = vmatmul.mubr.msk.bf16.gmra.mrb[8].mxu1 %vm259_vm2, %v233_v45  ;;  %868 = vmatprep.mubr.msk.bf16.mxu0 %vm259_vm2, %v218_v46  ;;  %v242_v31 = vpack.c.bf16 %v209_v27, %v208_v26  ;;  %v211_v35 = vld [vmem:[%s981_s19 + $0x1f8] sm:$0xff]  ;;  %v227_v36 = vpack.c.bf16 %v179_v33, %v178_v32 }
  0x26   : > { %900 = vmatprep.mubr.msk.bf16.mxu1 %vm259_vm2, %v234_v47  ;;  %v243_v37 = vpack.c.bf16 %v211_v35, %v210_v34 }
  0x2c   : > { %869 = vmatmul.mubr.msk.bf16.gmra.mrb[12].mxu0 %vm259_vm2, %v219_v56 }
  0x2d   : > { %901 = vmatmul.mubr.msk.bf16.gmra.mrb[12].mxu1 %vm259_vm2, %v235_v57  ;;  %872 = vmatprep.mubr.msk.bf16.mxu0 %vm259_vm2, %v220_v58 }
  0x2e   : > { %904 = vmatprep.mubr.msk.bf16.mxu1 %vm259_vm2, %v236_v59 }
  0x34   : > { %873 = vmatmul.mubr.msk.bf16.gmra.mrb[16].mxu0 %vm259_vm2, %v221_v4 }
  0x35   : > { %905 = vmatmul.mubr.msk.bf16.gmra.mrb[16].mxu1 %vm259_vm2, %v237_v5  ;;  %876 = vmatprep.mubr.msk.bf16.mxu0 %vm259_vm2, %v222_v6 }
  0x36   : > { %908 = vmatprep.mubr.msk.bf16.mxu1 %vm259_vm2, %v238_v7 }
  0x3c   : > { %877 = vmatmul.mubr.msk.bf16.gmra.mrb[20].mxu0 %vm259_vm2, %v223_v16 }
  0x3d   : > { %909 = vmatmul.mubr.msk.bf16.gmra.mrb[20].mxu1 %vm259_vm2, %v239_v17  ;;  %880 = vmatprep.mubr.msk.bf16.mxu0 %vm259_vm2, %v224_v18 }
  0x3e   : > { %912 = vmatprep.mubr.msk.bf16.mxu1 %vm259_vm2, %v240_v19 }
  0x44   : > { %881 = vmatmul.mubr.msk.bf16.gmra.mrb[24].mxu0 %vm259_vm2, %v225_v28 }
  0x45   : > { %913 = vmatmul.mubr.msk.bf16.gmra.mrb[24].mxu1 %vm259_vm2, %v241_v29  ;;  %884 = vmatprep.mubr.msk.bf16.mxu0 %vm259_vm2, %v226_v30 }
  0x46   : > { %916 = vmatprep.mubr.msk.bf16.mxu1 %vm259_vm2, %v242_v31 }
  0x4c   : > { %885 = vmatmul.mubr.msk.bf16.gmra.mrb[28].mxu0 %vm259_vm2, %v227_v36 }
  0x4d   : > { %917 = vmatmul.mubr.msk.bf16.gmra.mrb[28].mxu1 %vm259_vm2, %v243_v37 }
  0xe7   : > { %v858_v38 = vpop.f32.mrb[0].mxu0 }
  0xe8   : > { %655 = vst.msk [vmem:[%s1084_s22 + $0x10] sm:$0xff] %vm652_vm3, %v858_v38  ;;  %v890_v39 = vpop.f32.mrb[0].mxu1  ;;  %v397_v40 = vpop.f32.mrb[1].mxu0 }
  0xe9   : > { %687 = vst.msk [vmem:[%s1084_s22 + $0x110] sm:$0xff] %vm652_vm3, %v890_v39  ;;  %653 = vst.msk [vmem:[%s1084_s22] sm:$0xff] %vm652_vm3, %v397_v40  ;;  %v525_v41 = vpop.f32.mrb[1].mxu1  ;;  %v859_v42 = vpop.f32.mrb[2].mxu0 }
  0xea   : > { %685 = vst.msk [vmem:[%s1084_s22 + $0x100] sm:$0xff] %vm652_vm3, %v525_v41  ;;  %656 = vst.msk [vmem:[%s1084_s22 + $0x18] sm:$0xff] %vm652_vm3, %v859_v42  ;;  %v891_v43 = vpop.f32.mrb[2].mxu1  ;;  %v400_v44 = vpop.f32.mrb[3].mxu0 }
  0xeb   : > { %688 = vst.msk [vmem:[%s1084_s22 + $0x118] sm:$0xff] %vm652_vm3, %v891_v43  ;;  %654 = vst.msk [vmem:[%s1084_s22 + $0x8] sm:$0xff] %vm652_vm3, %v400_v44  ;;  %v528_v45 = vpop.f32.mrb[3].mxu1 }
  0xec   : > { %686 = vst.msk [vmem:[%s1084_s22 + $0x108] sm:$0xff] %vm652_vm3, %v528_v45 }
  0xef   : > { %v862_v46 = vpop.f32.mrb[4].mxu0 }
  0xf0   : > { %659 = vst.msk [vmem:[%s1084_s22 + $0x30] sm:$0xff] %vm652_vm3, %v862_v46  ;;  %v894_v47 = vpop.f32.mrb[4].mxu1  ;;  %v413_v48 = vpop.f32.mrb[5].mxu0 }
  0xf1   : > { %691 = vst.msk [vmem:[%s1084_s22 + $0x130] sm:$0xff] %vm652_vm3, %v894_v47  ;;  %657 = vst.msk [vmem:[%s1084_s22 + $0x20] sm:$0xff] %vm652_vm3, %v413_v48  ;;  %v541_v49 = vpop.f32.mrb[5].mxu1  ;;  %v863_v50 = vpop.f32.mrb[6].mxu0 }
  0xf2   : > { %689 = vst.msk [vmem:[%s1084_s22 + $0x120] sm:$0xff] %vm652_vm3, %v541_v49  ;;  %660 = vst.msk [vmem:[%s1084_s22 + $0x38] sm:$0xff] %vm652_vm3, %v863_v50  ;;  %v895_v51 = vpop.f32.mrb[6].mxu1  ;;  %v416_v52 = vpop.f32.mrb[7].mxu0 }
  0xf3   : > { %692 = vst.msk [vmem:[%s1084_s22 + $0x138] sm:$0xff] %vm652_vm3, %v895_v51  ;;  %658 = vst.msk [vmem:[%s1084_s22 + $0x28] sm:$0xff] %vm652_vm3, %v416_v52  ;;  %v544_v53 = vpop.f32.mrb[7].mxu1 }
  0xf4   : > { %690 = vst.msk [vmem:[%s1084_s22 + $0x128] sm:$0xff] %vm652_vm3, %v544_v53 }
  0xf7   : > { %v866_v54 = vpop.f32.mrb[8].mxu0 }
  0xf8   : > { %663 = vst.msk [vmem:[%s1084_s22 + $0x50] sm:$0xff] %vm652_vm3, %v866_v54  ;;  %v898_v55 = vpop.f32.mrb[8].mxu1  ;;  %v429_v56 = vpop.f32.mrb[9].mxu0 }
  0xf9   : > { %695 = vst.msk [vmem:[%s1084_s22 + $0x150] sm:$0xff] %vm652_vm3, %v898_v55  ;;  %661 = vst.msk [vmem:[%s1084_s22 + $0x40] sm:$0xff] %vm652_vm3, %v429_v56  ;;  %v557_v57 = vpop.f32.mrb[9].mxu1  ;;  %v867_v58 = vpop.f32.mrb[10].mxu0 }
  0xfa   : > { %693 = vst.msk [vmem:[%s1084_s22 + $0x140] sm:$0xff] %vm652_vm3, %v557_v57  ;;  %664 = vst.msk [vmem:[%s1084_s22 + $0x58] sm:$0xff] %vm652_vm3, %v867_v58  ;;  %v899_v59 = vpop.f32.mrb[10].mxu1  ;;  %v432_v60 = vpop.f32.mrb[11].mxu0 }
  0xfb   : > { %696 = vst.msk [vmem:[%s1084_s22 + $0x158] sm:$0xff] %vm652_vm3, %v899_v59  ;;  %662 = vst.msk [vmem:[%s1084_s22 + $0x48] sm:$0xff] %vm652_vm3, %v432_v60  ;;  %v560_v61 = vpop.f32.mrb[11].mxu1 }
  0xfc   : > { %694 = vst.msk [vmem:[%s1084_s22 + $0x148] sm:$0xff] %vm652_vm3, %v560_v61 }
  0xff   : > { %v870_v62 = vpop.f32.mrb[12].mxu0 }
 0x100   : > { %667 = vst.msk [vmem:[%s1084_s22 + $0x70] sm:$0xff] %vm652_vm3, %v870_v62  ;;  %v902_v63 = vpop.f32.mrb[12].mxu1  ;;  %v445_v0 = vpop.f32.mrb[13].mxu0 }
 0x101   : > { %699 = vst.msk [vmem:[%s1084_s22 + $0x170] sm:$0xff] %vm652_vm3, %v902_v63  ;;  %665 = vst.msk [vmem:[%s1084_s22 + $0x60] sm:$0xff] %vm652_vm3, %v445_v0  ;;  %v573_v1 = vpop.f32.mrb[13].mxu1  ;;  %v871_v2 = vpop.f32.mrb[14].mxu0 }
 0x102   : > { %697 = vst.msk [vmem:[%s1084_s22 + $0x160] sm:$0xff] %vm652_vm3, %v573_v1  ;;  %668 = vst.msk [vmem:[%s1084_s22 + $0x78] sm:$0xff] %vm652_vm3, %v871_v2  ;;  %v903_v3 = vpop.f32.mrb[14].mxu1  ;;  %v448_v4 = vpop.f32.mrb[15].mxu0 }
 0x103   : > { %700 = vst.msk [vmem:[%s1084_s22 + $0x178] sm:$0xff] %vm652_vm3, %v903_v3  ;;  %666 = vst.msk [vmem:[%s1084_s22 + $0x68] sm:$0xff] %vm652_vm3, %v448_v4  ;;  %v576_v5 = vpop.f32.mrb[15].mxu1 }
 0x104   : > { %698 = vst.msk [vmem:[%s1084_s22 + $0x168] sm:$0xff] %vm652_vm3, %v576_v5 }
 0x107   : > { %v874_v6 = vpop.f32.mrb[16].mxu0 }
 0x108   : > { %671 = vst.msk [vmem:[%s1084_s22 + $0x90] sm:$0xff] %vm652_vm3, %v874_v6  ;;  %v906_v7 = vpop.f32.mrb[16].mxu1  ;;  %v461_v8 = vpop.f32.mrb[17].mxu0 }
 0x109   : > { %703 = vst.msk [vmem:[%s1084_s22 + $0x190] sm:$0xff] %vm652_vm3, %v906_v7  ;;  %669 = vst.msk [vmem:[%s1084_s22 + $0x80] sm:$0xff] %vm652_vm3, %v461_v8  ;;  %v589_v9 = vpop.f32.mrb[17].mxu1  ;;  %v875_v10 = vpop.f32.mrb[18].mxu0 }
 0x10a   : > { %701 = vst.msk [vmem:[%s1084_s22 + $0x180] sm:$0xff] %vm652_vm3, %v589_v9  ;;  %672 = vst.msk [vmem:[%s1084_s22 + $0x98] sm:$0xff] %vm652_vm3, %v875_v10  ;;  %v907_v11 = vpop.f32.mrb[18].mxu1  ;;  %v464_v12 = vpop.f32.mrb[19].mxu0 }
 0x10b   : > { %704 = vst.msk [vmem:[%s1084_s22 + $0x198] sm:$0xff] %vm652_vm3, %v907_v11  ;;  %670 = vst.msk [vmem:[%s1084_s22 + $0x88] sm:$0xff] %vm652_vm3, %v464_v12  ;;  %v592_v13 = vpop.f32.mrb[19].mxu1 }
 0x10c   : > { %702 = vst.msk [vmem:[%s1084_s22 + $0x188] sm:$0xff] %vm652_vm3, %v592_v13 }
 0x10f   : > { %v878_v14 = vpop.f32.mrb[20].mxu0 }
 0x110   : > { %675 = vst.msk [vmem:[%s1084_s22 + $0xb0] sm:$0xff] %vm652_vm3, %v878_v14  ;;  %v910_v15 = vpop.f32.mrb[20].mxu1  ;;  %v477_v16 = vpop.f32.mrb[21].mxu0 }
 0x111   : > { %707 = vst.msk [vmem:[%s1084_s22 + $0x1b0] sm:$0xff] %vm652_vm3, %v910_v15  ;;  %673 = vst.msk [vmem:[%s1084_s22 + $0xa0] sm:$0xff] %vm652_vm3, %v477_v16  ;;  %v605_v17 = vpop.f32.mrb[21].mxu1  ;;  %v879_v18 = vpop.f32.mrb[22].mxu0 }
 0x112   : > { %705 = vst.msk [vmem:[%s1084_s22 + $0x1a0] sm:$0xff] %vm652_vm3, %v605_v17  ;;  %676 = vst.msk [vmem:[%s1084_s22 + $0xb8] sm:$0xff] %vm652_vm3, %v879_v18  ;;  %v911_v19 = vpop.f32.mrb[22].mxu1  ;;  %v480_v20 = vpop.f32.mrb[23].mxu0 }
 0x113   : > { %708 = vst.msk [vmem:[%s1084_s22 + $0x1b8] sm:$0xff] %vm652_vm3, %v911_v19  ;;  %674 = vst.msk [vmem:[%s1084_s22 + $0xa8] sm:$0xff] %vm652_vm3, %v480_v20  ;;  %v608_v21 = vpop.f32.mrb[23].mxu1 }
 0x114   : > { %706 = vst.msk [vmem:[%s1084_s22 + $0x1a8] sm:$0xff] %vm652_vm3, %v608_v21 }
 0x117   : > { %v882_v22 = vpop.f32.mrb[24].mxu0 }
 0x118   : > { %679 = vst.msk [vmem:[%s1084_s22 + $0xd0] sm:$0xff] %vm652_vm3, %v882_v22  ;;  %v914_v23 = vpop.f32.mrb[24].mxu1  ;;  %v493_v24 = vpop.f32.mrb[25].mxu0 }
 0x119   : > { %711 = vst.msk [vmem:[%s1084_s22 + $0x1d0] sm:$0xff] %vm652_vm3, %v914_v23  ;;  %677 = vst.msk [vmem:[%s1084_s22 + $0xc0] sm:$0xff] %vm652_vm3, %v493_v24  ;;  %v621_v25 = vpop.f32.mrb[25].mxu1  ;;  %v883_v26 = vpop.f32.mrb[26].mxu0 }
 0x11a   : > { %709 = vst.msk [vmem:[%s1084_s22 + $0x1c0] sm:$0xff] %vm652_vm3, %v621_v25  ;;  %680 = vst.msk [vmem:[%s1084_s22 + $0xd8] sm:$0xff] %vm652_vm3, %v883_v26  ;;  %v915_v27 = vpop.f32.mrb[26].mxu1  ;;  %v496_v28 = vpop.f32.mrb[27].mxu0 }
 0x11b   : > { %712 = vst.msk [vmem:[%s1084_s22 + $0x1d8] sm:$0xff] %vm652_vm3, %v915_v27  ;;  %678 = vst.msk [vmem:[%s1084_s22 + $0xc8] sm:$0xff] %vm652_vm3, %v496_v28  ;;  %v624_v29 = vpop.f32.mrb[27].mxu1 }
 0x11c   : > { %710 = vst.msk [vmem:[%s1084_s22 + $0x1c8] sm:$0xff] %vm652_vm3, %v624_v29 }
 0x11f   : > { %v886_v30 = vpop.f32.mrb[28].mxu0 }
 0x120   : > { %683 = vst.msk [vmem:[%s1084_s22 + $0xf0] sm:$0xff] %vm652_vm3, %v886_v30  ;;  %v918_v31 = vpop.f32.mrb[28].mxu1  ;;  %v509_v32 = vpop.f32.mrb[29].mxu0 }
 0x121   : > { %715 = vst.msk [vmem:[%s1084_s22 + $0x1f0] sm:$0xff] %vm652_vm3, %v918_v31  ;;  %681 = vst.msk [vmem:[%s1084_s22 + $0xe0] sm:$0xff] %vm652_vm3, %v509_v32  ;;  %v637_v33 = vpop.f32.mrb[29].mxu1  ;;  %v887_v34 = vpop.f32.mrb[30].mxu0 }
 0x122   : > { %713 = vst.msk [vmem:[%s1084_s22 + $0x1e0] sm:$0xff] %vm652_vm3, %v637_v33  ;;  %684 = vst.msk [vmem:[%s1084_s22 + $0xf8] sm:$0xff] %vm652_vm3, %v887_v34  ;;  %v919_v35 = vpop.f32.mrb[30].mxu1  ;;  %v512_v36 = vpop.f32.mrb[31].mxu0 }
 0x123   : > { %716 = vst.msk [vmem:[%s1084_s22 + $0x1f8] sm:$0xff] %vm652_vm3, %v919_v35  ;;  %682 = vst.msk [vmem:[%s1084_s22 + $0xe8] sm:$0xff] %vm652_vm3, %v512_v36  ;;  %v640_v37 = vpop.f32.mrb[31].mxu1 }
 0x124   : > { %714 = vst.msk [vmem:[%s1084_s22 + $0x1e8] sm:$0xff] %vm652_vm3, %v640_v37 }
 0x125 PF: > { %s12_s9 = sadd.s32 1, %s941_s9  }
 0x126   : > { %p9_p4 = scmp.ge.s32.totalorder %s12_s9, 4  }
 0x128   :  { %11 = sbr.rel (!%p9_p4) target bundleno = 1 (0x1), region = 58 }

</bundles_post_ra>
